<compile_context>
chip_gen: v7x
topology: tpu7x:2x2x1
jax: 0.10.0
libtpu: 0.0.40
codegen_flags: <defaults>
</compile_context>

<pallas_src>
import functools

import jax
import jax.numpy as jnp
from jax.experimental import pallas as pl
from jax.experimental.pallas import tpu as pltpu

ALPHA = 1.0
GAMMA = 2.0  # implemented as a square, see kernel
_LANES = 128


def _focal_loss_kernel(x_ref, t_ref, out_ref, *, n_total, tile_n):
    """x_ref: (tile_n, C) logits; t_ref: (tile_n, 1) int32; out_ref: (1,1,128) f32."""
    i = pl.program_id(0)

    x = x_ref[...].astype(jnp.float32)          # (tile_n, C), f32 math always
    t = t_ref[...]                              # (tile_n, 1) int32

    # --- numerically-stable cross entropy per row ---
    m = jnp.max(x, axis=-1, keepdims=True)      # (tile_n, 1)
    xm = x - m                                  # computed once, reused twice
    s = jnp.sum(jnp.exp(xm), axis=-1, keepdims=True)  # (tile_n, 1)

    # gather the target-class (shifted) logit with one fused where + lane
    # reduction (no dynamic gather on TPU); reuses xm instead of re-traversing x.
    col = jax.lax.broadcasted_iota(jnp.int32, x.shape, 1)                    # (tile_n, C)
    xm_t = jnp.sum(jnp.where(col == t, xm, 0.0), axis=-1, keepdims=True)     # (tile_n, 1)

    log_pt = jnp.log(s) - xm_t                  # == logsumexp(x) - x[target]
    pt = jnp.exp(-log_pt)
    one_m_pt = 1.0 - pt
    focal = ALPHA * (one_m_pt * one_m_pt) * log_pt                           # gamma == 2

    # mask rows past the true batch size (partial last tile); select, not mul,
    # so padded-block garbage (even Inf/NaN) cannot leak into the sum.
    row = jax.lax.broadcasted_iota(jnp.int32, focal.shape, 0) + i * tile_n
    focal = jnp.where(row < n_total, focal, 0.0)

    partial = jnp.sum(focal)                    # scalar partial sum for this tile

    # lane-dense (1, 1, 128) output block: partial sum in lane 0, zeros elsewhere.
    lane = jax.lax.broadcasted_iota(jnp.int32, (1, 1, _LANES), 2)
    out_ref[...] = jnp.where(lane == 0, partial, 0.0).astype(jnp.float32)


def _vmem_capacity_bytes():
    """Physical VMEM of the current chip; conservative v7x default if unknown."""
    try:
        return int(pltpu.get_tpu_info().vmem_capacity_bytes)
    except Exception:  # non-TPU tracing environments, older jax, etc.
        return 64 << 20


def _per_row_vmem_bytes(c, itemsize):
    """Peak live VMEM bytes per tile row: DMA buffers + in-kernel f32 temps."""
    c_pad = ((c + _LANES - 1) // _LANES) * _LANES          # lane padding
    in_bytes = 2 * (c_pad * itemsize + _LANES * 4)         # double-buffered x, t blocks
    tmp_bytes = 5 * c_pad * 4                              # f32: x, xm, exp, iota, select
    return in_bytes + tmp_bytes


def _pick_tile_n(n, c, itemsize, vmem_capacity):
    """Largest aligned row tile that fits the generation-aware VMEM budget."""
    budget = min(int(vmem_capacity * 0.6), 96 << 20)       # ~38 MiB on v7x, ~77 MiB v5e/v6e
    per_row = _per_row_vmem_bytes(c, itemsize)
    align = 16 if itemsize == 2 else 8                     # bf16 packs 16 sublanes / vreg
    t = budget // per_row
    t = int(max(align, (t // align) * align))
    if n <= t:
        # Whole batch fits one block.  Split into >= 2 aligned tiles when
        # possible so the "parallel" grid axis can shard across both v7x
        # TensorCores (also halves the per-TC VMEM footprint).
        if n >= 2 * align:
            half = (n + 1) // 2
            return ((half + align - 1) // align) * align
        return n                                           # tiny batch: single block
    return t


def focal_loss(inputs, targets, *, tile_n=None, logits_dtype=jnp.bfloat16):
    """Focal loss (alpha=1, gamma=2, mean reduction).

    inputs:  (N, C) float logits; targets: (N,) integer class ids in [0, C).
    Logits are fed to the kernel as bf16 by default (the kernel is HBM-bound;
    this halves input bytes) -- in-kernel math is always f32.  Pass
    logits_dtype=None to keep the caller's dtype.
    """
    n, c = inputs.shape
    if logits_dtype is not None and inputs.dtype != jnp.dtype(logits_dtype):
        inputs = inputs.astype(logits_dtype)
    itemsize = jnp.dtype(inputs.dtype).itemsize

    cap = _vmem_capacity_bytes()
    if tile_n is None:
        tile_n = _pick_tile_n(n, c, itemsize, cap)
    tile_n = int(min(tile_n, n))
    num_tiles = (n + tile_n - 1) // tile_n

    t2d = targets.astype(jnp.int32).reshape(n, 1)

    kernel = functools.partial(_focal_loss_kernel, n_total=n, tile_n=tile_n)

    # VMEM actually needed (buffers + temps + tiny output) with headroom,
    # capped at ~80% of this generation's physical VMEM.
    vmem_need = tile_n * _per_row_vmem_bytes(c, itemsize) + 4 * _LANES * 4
    vmem_limit = int(min(max(2 * vmem_need, 16 << 20), int(cap * 0.8)))
    vmem_limit = int(max(vmem_limit, vmem_need + (1 << 20)))

    cost = pl.CostEstimate(
        flops=6 * n * c,
        transcendentals=n * c + 2 * n,                     # exp(x-m) + exp(-log_pt) + log
        bytes_accessed=n * c * itemsize + n * 4 + num_tiles * _LANES * 4,
    )

    partials = pl.pallas_call(
        kernel,
        out_shape=jax.ShapeDtypeStruct((num_tiles, 1, _LANES), jnp.float32),
        grid=(num_tiles,),
        in_specs=[
            pl.BlockSpec((tile_n, c), lambda i: (i, 0)),
            pl.BlockSpec((tile_n, 1), lambda i: (i, 0)),
        ],
        out_specs=pl.BlockSpec((1, 1, _LANES), lambda i: (i, 0, 0)),
        compiler_params=pltpu.CompilerParams(
            dimension_semantics=("parallel",),   # tiles independent -> both TCs on v7x
            vmem_limit_bytes=vmem_limit,
        ),
        cost_estimate=cost,
    )(inputs, t2d)

    # tiny finalize outside the kernel: only lane 0 of each tile is non-zero.
    return jnp.sum(partials) / jnp.float32(n)


if __name__ == "__main__":
    key = jax.random.PRNGKey(0)

    def reference(logits, tgts):
        xf = logits.astype(jnp.float32)
        lse = jax.scipy.special.logsumexp(xf, axis=-1)
        log_pt = lse - xf[jnp.arange(xf.shape[0]), tgts]
        pt = jnp.exp(-log_pt)
        return jnp.mean(ALPHA * (1.0 - pt) ** GAMMA * log_pt)

    k1, k2, k3, k4, k5, k6 = jax.random.split(key, 6)

    # case 1: small toy shape, single tile, explicit f32 input path
    N1, C1 = 8, 32
    logits1 = jax.random.normal(k1, (N1, C1), dtype=jnp.float32)
    targets1 = jax.random.randint(k2, (N1,), 0, C1, dtype=jnp.int32)
    loss1 = jax.block_until_ready(focal_loss(logits1, targets1, logits_dtype=None))
    ref1 = reference(logits1, targets1)
    assert jnp.allclose(loss1, ref1, atol=1e-5, rtol=1e-5), (loss1, ref1)

    # case 2: multi-tile grid with a partial last tile (N % tile_n != 0), f32
    N2, C2, TILE = 20, 32, 8
    logits2 = jax.random.normal(k3, (N2, C2), dtype=jnp.float32)
    targets2 = jax.random.randint(k4, (N2,), 0, C2, dtype=jnp.int32)
    loss2 = jax.block_until_ready(
        focal_loss(logits2, targets2, tile_n=TILE, logits_dtype=None))
    ref2 = reference(logits2, targets2)
    assert jnp.allclose(loss2, ref2, atol=1e-5, rtol=1e-5), (loss2, ref2)

    # case 3: default bf16 input path + auto >=2-tile split (megacore-friendly).
    N3, C3 = 32, 128
    logits3 = jax.random.normal(k5, (N3, C3), dtype=jnp.float32)
    targets3 = jax.random.randint(k6, (N3,), 0, C3, dtype=jnp.int32)
    loss3 = jax.block_until_ready(focal_loss(logits3, targets3))      # bf16 default
    ref3 = reference(logits3.astype(jnp.bfloat16), targets3)          # same quantized logits
    assert jnp.allclose(loss3, ref3, atol=1e-5, rtol=1e-5), (loss3, ref3)

    print("KERNEL_OK")
</pallas_src>

<mosaic_0001>
module attributes {stable_mosaic.version = 11 : i64} {
  func.func @_focal_loss_kernel(%arg0: i32, %arg1: memref<8x32xf32, #tpu.memory_space<vmem>>, %arg2: memref<8x1xi32, #tpu.memory_space<vmem>>, %arg3: memref<1x1x128xf32, #tpu.memory_space<vmem>>) attributes {dimension_semantics = [#tpu.dimension_semantics<parallel>], iteration_bounds = array<i64: 1>, scalar_prefetch = 0 : i64, scratch_operands = 0 : i64, tpu.core_type = #tpu.core_type<tc>, window_params = [{transform_indices = @transform_0, window_bounds = array<i64: 8, 32>}, {transform_indices = @transform_1, window_bounds = array<i64: 8, 1>}, {transform_indices = @transform_2, window_bounds = array<i64: 1, 1, 128>}]} {
    %c0 = arith.constant 0 : index
    %c0_0 = arith.constant 0 : index
    %0 = vector.load %arg1[%c0, %c0_0] : memref<8x32xf32, #tpu.memory_space<vmem>>, vector<8x32xf32>
    %c0_1 = arith.constant 0 : index
    %c0_2 = arith.constant 0 : index
    %1 = vector.load %arg2[%c0_1, %c0_2] : memref<8x1xi32, #tpu.memory_space<vmem>>, vector<8x1xi32>
    %cst = arith.constant dense<0xFF800000> : vector<8xf32>
    %2 = vector.multi_reduction <maximumf>, %0, %cst [1] : vector<8x32xf32> to vector<8xf32>
    %3 = vector.shape_cast %2 : vector<8xf32> to vector<8x1xf32>
    %4 = vector.broadcast %3 : vector<8x1xf32> to vector<8x32xf32>
    %5 = arith.subf %0, %4 : vector<8x32xf32>
    %6 = math.exp %5 : vector<8x32xf32>
    %cst_3 = arith.constant dense<0.000000e+00> : vector<8xf32>
    %7 = vector.multi_reduction <add>, %6, %cst_3 [1] : vector<8x32xf32> to vector<8xf32>
    %8 = vector.shape_cast %7 : vector<8xf32> to vector<8x1xf32>
    %9 = tpu.iota {dimensions = array<i32: 1>} : vector<8x32xi32>
    %10 = vector.broadcast %1 : vector<8x1xi32> to vector<8x32xi32>
    %11 = arith.cmpi eq, %9, %10 : vector<8x32xi32>
    %cst_4 = arith.constant 0.000000e+00 : f32
    %12 = vector.broadcast %cst_4 : f32 to vector<8x32xf32>
    %13 = arith.select %11, %5, %12 : vector<8x32xi1>, vector<8x32xf32>
    %cst_5 = arith.constant dense<0.000000e+00> : vector<8xf32>
    %14 = vector.multi_reduction <add>, %13, %cst_5 [1] : vector<8x32xf32> to vector<8xf32>
    %15 = vector.shape_cast %14 : vector<8xf32> to vector<8x1xf32>
    %16 = math.log %8 : vector<8x1xf32>
    %17 = arith.subf %16, %15 : vector<8x1xf32>
    %cst_6 = arith.constant 0.000000e+00 : f32
    %18 = vector.broadcast %cst_6 : f32 to vector<8x1xf32>
    %19 = arith.subf %18, %17 : vector<8x1xf32>
    %20 = math.exp %19 : vector<8x1xf32>
    %cst_7 = arith.constant 1.000000e+00 : f32
    %21 = vector.broadcast %cst_7 : f32 to vector<8x1xf32>
    %22 = arith.subf %21, %20 : vector<8x1xf32>
    %23 = arith.mulf %22, %22 : vector<8x1xf32>
    %cst_8 = arith.constant 1.000000e+00 : f32
    %24 = vector.broadcast %cst_8 : f32 to vector<8x1xf32>
    %25 = arith.mulf %24, %23 : vector<8x1xf32>
    %26 = arith.mulf %25, %17 : vector<8x1xf32>
    %27 = tpu.iota {dimensions = array<i32: 0>} : vector<8x1xi32>
    %c8_i32 = arith.constant 8 : i32
    %28 = arith.muli %arg0, %c8_i32 : i32
    %29 = vector.broadcast %28 : i32 to vector<8x1xi32>
    %30 = arith.addi %27, %29 : vector<8x1xi32>
    %c8_i32_9 = arith.constant 8 : i32
    %31 = vector.broadcast %c8_i32_9 : i32 to vector<8x1xi32>
    %32 = arith.cmpi slt, %30, %31 : vector<8x1xi32>
    %cst_10 = arith.constant 0.000000e+00 : f32
    %33 = vector.broadcast %cst_10 : f32 to vector<8x1xf32>
    %34 = arith.select %32, %26, %33 : vector<8x1xi1>, vector<8x1xf32>
    %35 = vector.shape_cast %34 : vector<8x1xf32> to vector<1x8x1xf32>
    %cst_11 = arith.constant dense<0.000000e+00> : vector<1xf32>
    %36 = vector.multi_reduction <add>, %35, %cst_11 [1, 2] : vector<1x8x1xf32> to vector<1xf32>
    %37 = vector.shape_cast %36 : vector<1xf32> to vector<1x1x1xf32>
    %38 = vector.extract %37[0, 0, 0] : f32 from vector<1x1x1xf32>
    %39 = tpu.iota {dimensions = array<i32: 2>} : vector<1x1x128xi32>
    %c0_i32 = arith.constant 0 : i32
    %40 = vector.broadcast %c0_i32 : i32 to vector<1x1x128xi32>
    %41 = arith.cmpi eq, %39, %40 : vector<1x1x128xi32>
    %cst_12 = arith.constant 0.000000e+00 : f32
    %42 = vector.broadcast %38 : f32 to vector<1x1x128xf32>
    %43 = vector.broadcast %cst_12 : f32 to vector<1x1x128xf32>
    %44 = arith.select %41, %42, %43 : vector<1x1x128xi1>, vector<1x1x128xf32>
    %c0_13 = arith.constant 0 : index
    %c0_14 = arith.constant 0 : index
    %c0_15 = arith.constant 0 : index
    %45 = vector.load %arg3[%c0_13, %c0_14, %c0_15] : memref<1x1x128xf32, #tpu.memory_space<vmem>>, vector<1x1x128xf32>
    tpu.vector_store %arg3[%c0_13, %c0_14, %c0_15], %44 {strides = array<i32>} : memref<1x1x128xf32, #tpu.memory_space<vmem>>, vector<1x1x128xf32>,
    return
  }
  func.func @transform_0(%arg0: i32) -> (i32, i32) {
    %c0_i32 = arith.constant 0 : i32
    %c0_i32_0 = arith.constant 0 : i32
    return %arg0, %c0_i32 : i32, i32
  }
  func.func @transform_1(%arg0: i32) -> (i32, i32) {
    %c0_i32 = arith.constant 0 : i32
    %c0_i32_0 = arith.constant 0 : i32
    return %arg0, %c0_i32 : i32, i32
  }
  func.func @transform_2(%arg0: i32) -> (i32, i32, i32) {
    %c0_i32 = arith.constant 0 : i32
    %c0_i32_0 = arith.constant 0 : i32
    %c0_i32_1 = arith.constant 0 : i32
    return %arg0, %c0_i32, %c0_i32_0 : i32, i32, i32
  }
}

</mosaic_0001>

<bundles_post_ra>
// kernel: tpu_custom_call.1
= control target key start
LH: loop header
LB: loop body
LE: loop exit
PB: predicated region body
PF: predicated region fallthrough
CT: control target
= control target key end

     0   :  { %vm14_vm0 = vcmask 261120   ;;  %s152_s0 = inlined_call_operand.vmem [shape: f32[8,32], index: 0, kind: input, shape index: {}]   ;;  %s153_s1 = inlined_call_operand.vmem [shape: s32[8,1], index: 1, kind: input, shape index: {}]   ;;  %s154_s2 = inlined_call_operand.hbm [shape: f32[1,1,128], index: 2, kind: output, shape index: {}]  }
   0x1   :  { %v12_v0 = vld [vmem:[%s152_s0] sm:$0xff] }
   0x2   :  { %7 = vsyncpa [#allocation3], 0  ;;  %v15_v1 = vsel %vm14_vm0, %v12_v0, -inf  ;;  %v114_v2 = vmov 0   ;;  %v13_v3 = vld [vmem:[%s153_s1] sm:$0xff]  ;;  %v24_v7 = vlaneseq  ;;  %vm50_vm2 = vcmask 7168  }
   0x3   :  { %83 = vset.pattern.permute.xlu0 %v114_v2  ;;  %s115_s0 = smov [#allocation2]  }
   0x4   :  { %16 = vmax.xlane.f32.xlu0 %v15_v1  ;;  %v25_v8 = vand.u32 127, %v24_v7  ;;  %s71_s1 = sshll.u32 %s115_s0, 4  ;;  %s72_s1 = int_to_ptr.vmem [resolvable:$true] %s71_s1 }
   0x5   :  { %s90_s14 = scalar_lea.vmem %s72_s1, 16  ;;  %s94_s15 = scalar_lea.vmem %s72_s1, 32 }
   0x6   :  { %vm61_vm3 = vcmp.eq.s32.totalorder %v25_v8, 0  ;;  %p91_p0 = scmp.ne.s32.totalorder %s72_s1, %s90_s14  ;;  %p95_p1 = scmp.lt.s32.totalorder %s72_s1, %s72_s1 }
   0x7   :  { %p96_p2 = scmp.lt.s32.totalorder %s94_s15, %s90_s14 }
   0x9   :  { %p97_p3 = por %p96_p2, %p95_p1 }
   0xb   :  { %p98_p4 = pnand %p97_p3, %p91_p0 }
  0x1a   :  { %27 = vperm.xlu0 %83, %v13_v3  }
  0x91   :  { %v17_v4 = vpop.xlane.xlu0 %16 }
  0x92   :  { %v18_v5 = vsub.f32 %v12_v0, %v17_v4 }
  0x94   :  { %v19_v6 = vmul.f32 1.442695, %v18_v5 }
  0x96   :  { %84 = vpow2.f32 %v19_v6 }
  0x99   :  { %v28_v9 = vpop.permute.xlu0 %27 }
  0x9a   :  { %vm29_vm1 = vcmp.eq.s32.totalorder %v25_v8, %v28_v9 }
  0x9b   :  { %v30_v12 = vsel %vm29_vm1, %v18_v5, 0.0 }
  0x9c   :  { %v31_v13 = vsel %vm14_vm0, %v30_v12, 0.0 }
  0xa0   :  { %v85_v10 = vpop.eup %84 }
  0xa1   :  { %v21_v11 = vsel %vm14_vm0, %v85_v10, 0.0 }
  0xa2   :  { %22 = vadd.xlane.f32.xlu1 %v21_v11 }
  0xa6   :  { %32 = vadd.xlane.f32.xlu1 %v31_v13 }
 0x12f   :  { %v23_v14 = vpop.xlane.xlu1 %22 }
 0x130   :  { %86 = vlog2.f32 %v23_v14 }
 0x133   :  { %v33_v17 = vpop.xlane.xlu1 %32 }
 0x13a   :  { %v87_v15 = vpop.eup %86 }
 0x13b   :  { %v35_v16 = vmul.f32 0.6931472, %v87_v15 }
 0x13d   :  { %v36_v18 = vsub.f32 %v35_v16, %v33_v17 }
 0x13f   :  { %v37_v19 = vsub.f32 0.0, %v36_v18 }
 0x141   :  { %v38_v20 = vmul.f32 1.442695, %v37_v19 }
 0x143   :  { %88 = vpow2.f32 %v38_v20 }
 0x14d   :  { %v89_v21 = vpop.eup %88 }
 0x14e   :  { %v40_v22 = vsub.f32 1.0, %v89_v21 }
 0x150   :  { %v41_v23 = vmul.f32 %v40_v22, %v40_v22 }
 0x152   :  { %v42_v24 = vmul.f32 %v41_v23, %v36_v18 }
 0x154   :  { %v51_v25 = vsel %vm50_vm2, %v42_v24, 0.0 }
 0x155   :  { %52 = vadd.xlane.f32.xlu1 %v51_v25 }
 0x1e2   :  { %v53_v26 = vpop.xlane.xlu1 %52 }
 0x1e3   :  { %v54_v27 = vrot.slane %v53_v26, 4 }
 0x1e5   :  { %v55_v28 = vadd.f32 %v54_v27, %v53_v26 }
 0x1e7   :  { %v56_v29 = vrot.slane %v55_v28, 2 }
 0x1e9   :  { %v57_v30 = vadd.f32 %v56_v29, %v55_v28 }
 0x1eb   :  { %v58_v31 = vrot.slane %v57_v30, 1 }
 0x1ed   :  { %v59_v32 = vadd.f32 %v58_v31, %v57_v30 }
 0x1ef   :  { %79 = vpush %v59_v32 }
 0x220   :  { %s80_s13 = spop %79 }
 0x221   :  { %v62_v33 = vstv %s80_s13 }
 0x222   :  { %v63_v34 = vsel %vm61_vm3, %v62_v33, 0.0 }
 0x223   :  { %64 = vst [vmem:[#allocation2] sm:$0x1] %v63_v34 }
 0x224   :  { %101 = shalt.err (!%p98_p4)
}
 0x225   :  { %s102_s18 = scalar_lea.hbm %s154_s2, 16 }
 0x226   :  { %p103_p5 = scmp.ne.s32.totalorder %s154_s2, %s102_s18  ;;  %p106_p6 = scmp.lt.u32.totalorder %s102_s18, %s154_s2 }
 0x228   :  { %p108_p7 = pnand %p106_p6, %p103_p5 }
 0x22a   :  { %111 = shalt.err (!%p108_p7)
}
 0x22b   :  { %74 = dma.vmem_to_hbm [thread:$0]  %s72_s1, 16, %s154_s2, [#allocation3]  }
 0x22c   :  { %112 = dma.done.wait [#allocation3], 16  }
 0x22d   :  { %113 = vsyncadd [#allocation3], 4294967280 }
 0x22e   :  { %78 = vsyncpa [#allocation3], 1 }

</bundles_post_ra>
